<compile_context>
chip_gen: v5e
topology: v5e:2x2
jax: 0.10.0
libtpu: 0.0.40
codegen_flags: <defaults>
</compile_context>

<pallas_src>
import functools

import jax
import jax.numpy as jnp
import numpy as np
from jax.experimental import pallas as pl
from jax.experimental.pallas import tpu as pltpu

HIDDEN = 128      # hidden width of the module (Linear(state_dim, 128))
LANE = 128        # TPU lane width: action_dim padded to this inside the kernel only
NEG_INF = -1e30   # bias for padded logit columns: exp(NEG_INF - max) == 0


def _round_up(n, m):
    return ((n + m - 1) // m) * m


def policy_kernel(x_ref, w1_ref, b1_ref, w2_ref, b2_ref, out_ref, *, num_actions):
    """Fused Linear -> ReLU -> Linear -> Softmax on one (tb, S) batch tile."""
    # x streamed as f32; cast to the (possibly bf16) weight dtype on the VPU,
    # hidden under the DMA instead of a separate XLA cast pass over HBM.
    x = x_ref[...].astype(w1_ref.dtype)

    # Layer 1: MXU matmul, f32 accumulate; bias + ReLU in f32 (v5e VPU has no bf16).
    h = jnp.dot(x, w1_ref[...], preferred_element_type=jnp.float32)
    h = jnp.maximum(h + b1_ref[...], 0.0)

    # Layer 2: lane-dense (padded-to-128) logits; padded columns carry a -1e30 bias.
    logits = jnp.dot(h.astype(w2_ref.dtype), w2_ref[...],
                     preferred_element_type=jnp.float32)
    logits = logits + b2_ref[...]

    # Numerically stable softmax over the padded last axis.  Exact divide: the kernel
    # is HBM-bound, so the divide is wall-clock free and rows sum to 1 exactly (f32).
    m = jnp.max(logits, axis=-1, keepdims=True)
    e = jnp.exp(logits - m)
    denom = jnp.sum(e, axis=-1, keepdims=True)
    probs = e / denom

    # Store only the real action columns; the padded columns never touch HBM.
    out_ref[...] = probs[:, :num_actions].astype(out_ref.dtype)


def prepare_params(w1, b1, w2, b2, *, use_bf16=True):
    """Pad action_dim to a lane-dense 128 and cast weights ONCE (outside forward).

    Weights stored transposed vs PyTorch: w1 (state_dim, 128), w2 (128, action_dim).
    Returns (params_tuple, action_dim).
    """
    A = w2.shape[1]
    A_pad = max(LANE, _round_up(A, LANE))
    if A_pad != A:
        w2 = jnp.pad(w2, ((0, 0), (0, A_pad - A)))                        # zero columns
        b2 = jnp.pad(b2, ((0, 0), (0, A_pad - A)), constant_values=NEG_INF)
    wdt = jnp.bfloat16 if use_bf16 else jnp.float32
    params = (w1.astype(wdt), b1.astype(jnp.float32),
              w2.astype(wdt), b2.astype(jnp.float32))
    return params, A


def _choose_tile(B, block_b):
    """Batch tile: multiple of 8, capped at block_b; prefer an even step count (v7x)."""
    tb = min(_round_up(block_b, 8), _round_up(B, 8))
    steps = pl.cdiv(B, tb)
    if steps > 1 and steps % 2 == 1:
        tb_half = _round_up(max(8, (tb + 1) // 2), 8)
        if pl.cdiv(B, tb_half) % 2 == 0:
            tb = tb_half
    return tb


@functools.partial(jax.jit, static_argnames=("num_actions", "block_b"))
def policy_network_forward(x, params, *, num_actions, block_b=4096):
    """Forward pass. x: (B, state_dim) f32 -> (B, action_dim) f32 probabilities."""
    w1, b1, w2, b2 = params
    B, S = x.shape
    H = w1.shape[1]
    A_pad = w2.shape[1]
    A = num_actions

    tb = _choose_tile(B, block_b)
    # Ragged last block handled by Pallas: out-of-bounds output rows are masked,
    # garbage input rows only ever affect their own (discarded) output rows.
    grid = (pl.cdiv(B, tb),)

    cost = pl.CostEstimate(
        flops=2 * B * (S * H + H * A_pad),
        transcendentals=B * A_pad,
        bytes_accessed=(x.size * x.dtype.itemsize
                        + B * A * 4
                        + w1.size * w1.dtype.itemsize + b1.size * 4
                        + w2.size * w2.dtype.itemsize + b2.size * 4),
    )

    kernel = functools.partial(policy_kernel, num_actions=A)

    return pl.pallas_call(
        kernel,
        out_shape=jax.ShapeDtypeStruct((B, A), jnp.float32),
        grid_spec=pltpu.PrefetchScalarGridSpec(
            num_scalar_prefetch=0,
            grid=grid,
            in_specs=[
                pl.BlockSpec((tb, S), lambda i: (i, 0)),      # streamed f32 x tile
                pl.BlockSpec((S, H), lambda i: (0, 0)),       # weights resident:
                pl.BlockSpec((1, H), lambda i: (0, 0)),       #   constant index_maps
                pl.BlockSpec((H, A_pad), lambda i: (0, 0)),   #   -> DMA'd once
                pl.BlockSpec((1, A_pad), lambda i: (0, 0)),
            ],
            # Last dim A equals the full array dim, so the (8,128) rule is satisfied;
            # only the real action columns are written back to HBM.
            out_specs=pl.BlockSpec((tb, A), lambda i: (i, 0)),
        ),
        compiler_params=pltpu.CompilerParams(
            dimension_semantics=("parallel",),   # batch tiles shard across TCs on v7x
        ),
        cost_estimate=cost,
    )(x, w1, b1, w2, b2)


def init_params(key, state_dim, hidden_dim, action_dim):
    """PyTorch-default-style init; weights stored as (in_features, out_features)."""
    k1, k2, k3, k4 = jax.random.split(key, 4)
    lim1 = 1.0 / np.sqrt(state_dim)
    lim2 = 1.0 / np.sqrt(hidden_dim)
    w1 = jax.random.uniform(k1, (state_dim, hidden_dim), jnp.float32, -lim1, lim1)
    b1 = jax.random.uniform(k2, (1, hidden_dim), jnp.float32, -lim1, lim1)
    w2 = jax.random.uniform(k3, (hidden_dim, action_dim), jnp.float32, -lim2, lim2)
    b2 = jax.random.uniform(k4, (1, action_dim), jnp.float32, -lim2, lim2)
    return w1, b1, w2, b2


if __name__ == "__main__":
    state_dim, hidden_dim, action_dim = 32, HIDDEN, 8
    batch = 37  # not a multiple of the tile -> exercises the ragged last block

    key = jax.random.PRNGKey(0)
    kx, kp = jax.random.split(key)
    x = jax.random.normal(kx, (batch, state_dim), jnp.float32)
    w1, b1, w2, b2 = init_params(kp, state_dim, hidden_dim, action_dim)

    # Pad / cast weights once (would be cached alongside the params in real use).
    params, A = prepare_params(w1, b1, w2, b2, use_bf16=True)

    # Small block_b so the demo exercises a multi-step batch grid + ragged tail.
    out = policy_network_forward(x, params, num_actions=A, block_b=16)
    out = jax.block_until_ready(out)
    assert out.shape == (batch, action_dim)

    # Reference with the same dtype path (bf16 matmul inputs, f32 accumulate/softmax).
    cd = jnp.bfloat16
    h_ref = jnp.maximum(
        jnp.dot(x.astype(cd), w1.astype(cd), preferred_element_type=jnp.float32) + b1,
        0.0)
    logits_ref = jnp.dot(h_ref.astype(cd), w2.astype(cd),
                         preferred_element_type=jnp.float32) + b2
    ref = jax.nn.softmax(logits_ref, axis=-1)

    np.testing.assert_allclose(np.asarray(out), np.asarray(ref), rtol=1e-3, atol=1e-5)
    np.testing.assert_allclose(np.asarray(out).sum(-1), np.ones(batch),
                               rtol=0, atol=1e-5)

    print("KERNEL_OK")
</pallas_src>

<mosaic_0001>
module attributes {stable_mosaic.version = 11 : i64} {
  func.func @policy_kernel(%arg0: i32, %arg1: memref<16x32xf32, #tpu.memory_space<vmem>>, %arg2: memref<32x128xbf16, #tpu.memory_space<vmem>>, %arg3: memref<1x128xf32, #tpu.memory_space<vmem>>, %arg4: memref<128x128xbf16, #tpu.memory_space<vmem>>, %arg5: memref<1x128xf32, #tpu.memory_space<vmem>>, %arg6: memref<16x8xf32, #tpu.memory_space<vmem>>) attributes {dimension_semantics = [#tpu.dimension_semantics<parallel>], iteration_bounds = array<i64: 3>, scalar_prefetch = 0 : i64, scratch_operands = 0 : i64, tpu.core_type = #tpu.core_type<tc>, window_params = [{transform_indices = @transform_0, window_bounds = array<i64: 16, 32>}, {pipeline_mode = #tpu.pipeline_mode<synchronous>, transform_indices = @transform_1, window_bounds = array<i64: 32, 128>}, {pipeline_mode = #tpu.pipeline_mode<synchronous>, transform_indices = @transform_2, window_bounds = array<i64: 1, 128>}, {pipeline_mode = #tpu.pipeline_mode<synchronous>, transform_indices = @transform_3, window_bounds = array<i64: 128, 128>}, {pipeline_mode = #tpu.pipeline_mode<synchronous>, transform_indices = @transform_4, window_bounds = array<i64: 1, 128>}, {transform_indices = @transform_5, window_bounds = array<i64: 16, 8>}]} {
    %c0 = arith.constant 0 : index
    %c0_0 = arith.constant 0 : index
    %0 = vector.load %arg1[%c0, %c0_0] : memref<16x32xf32, #tpu.memory_space<vmem>>, vector<16x32xf32>
    %1 = arith.truncf %0 : vector<16x32xf32> to vector<16x32xbf16>
    %c0_1 = arith.constant 0 : index
    %c0_2 = arith.constant 0 : index
    %2 = vector.load %arg2[%c0_1, %c0_2] : memref<32x128xbf16, #tpu.memory_space<vmem>>, vector<32x128xbf16>
    %cst = arith.constant dense<0.000000e+00> : vector<16x128xf32>
    %3 = tpu.matmul %1, %2, %cst {dimension_numbers = #tpu.dot_dimension_numbers<[1], [0], [0], [1], [0, 0, 1, 1], [], []>} : vector<16x32xbf16>, vector<32x128xbf16>, vector<16x128xf32> -> vector<16x128xf32>
    %c0_3 = arith.constant 0 : index
    %c0_4 = arith.constant 0 : index
    %4 = vector.load %arg3[%c0_3, %c0_4] : memref<1x128xf32, #tpu.memory_space<vmem>>, vector<1x128xf32>
    %5 = vector.broadcast %4 : vector<1x128xf32> to vector<16x128xf32>
    %6 = arith.addf %3, %5 : vector<16x128xf32>
    %cst_5 = arith.constant 0.000000e+00 : f32
    %7 = vector.broadcast %cst_5 : f32 to vector<16x128xf32>
    %8 = arith.maximumf %6, %7 : vector<16x128xf32>
    %9 = arith.truncf %8 : vector<16x128xf32> to vector<16x128xbf16>
    %c0_6 = arith.constant 0 : index
    %c0_7 = arith.constant 0 : index
    %10 = vector.load %arg4[%c0_6, %c0_7] : memref<128x128xbf16, #tpu.memory_space<vmem>>, vector<128x128xbf16>
    %cst_8 = arith.constant dense<0.000000e+00> : vector<16x128xf32>
    %11 = tpu.matmul %9, %10, %cst_8 {dimension_numbers = #tpu.dot_dimension_numbers<[1], [0], [0], [1], [0, 0, 1, 1], [], []>} : vector<16x128xbf16>, vector<128x128xbf16>, vector<16x128xf32> -> vector<16x128xf32>
    %c0_9 = arith.constant 0 : index
    %c0_10 = arith.constant 0 : index
    %12 = vector.load %arg5[%c0_9, %c0_10] : memref<1x128xf32, #tpu.memory_space<vmem>>, vector<1x128xf32>
    %13 = vector.broadcast %12 : vector<1x128xf32> to vector<16x128xf32>
    %14 = arith.addf %11, %13 : vector<16x128xf32>
    %cst_11 = arith.constant dense<0xFF800000> : vector<16xf32>
    %15 = vector.multi_reduction <maximumf>, %14, %cst_11 [1] : vector<16x128xf32> to vector<16xf32>
    %16 = vector.shape_cast %15 : vector<16xf32> to vector<16x1xf32>
    %17 = vector.broadcast %16 : vector<16x1xf32> to vector<16x128xf32>
    %18 = arith.subf %14, %17 : vector<16x128xf32>
    %19 = math.exp %18 : vector<16x128xf32>
    %cst_12 = arith.constant dense<0.000000e+00> : vector<16xf32>
    %20 = vector.multi_reduction <add>, %19, %cst_12 [1] : vector<16x128xf32> to vector<16xf32>
    %21 = vector.shape_cast %20 : vector<16xf32> to vector<16x1xf32>
    %22 = vector.broadcast %21 : vector<16x1xf32> to vector<16x128xf32>
    %23 = arith.divf %19, %22 : vector<16x128xf32>
    %24 = vector.extract_strided_slice %23 {offsets = [0, 0], sizes = [16, 8], strides = [1, 1]} : vector<16x128xf32> to vector<16x8xf32>
    %c0_13 = arith.constant 0 : index
    %c0_14 = arith.constant 0 : index
    %25 = vector.load %arg6[%c0_13, %c0_14] : memref<16x8xf32, #tpu.memory_space<vmem>>, vector<16x8xf32>
    tpu.vector_store %arg6[%c0_13, %c0_14], %24 {strides = array<i32>} : memref<16x8xf32, #tpu.memory_space<vmem>>, vector<16x8xf32>,
    return
  }
  func.func @transform_0(%arg0: i32) -> (i32, i32) {
    %c0_i32 = arith.constant 0 : i32
    %c0_i32_0 = arith.constant 0 : i32
    return %arg0, %c0_i32 : i32, i32
  }
  func.func @transform_1(%arg0: i32) -> (i32, i32) {
    %c0_i32 = arith.constant 0 : i32
    %c0_i32_0 = arith.constant 0 : i32
    %c0_i32_1 = arith.constant 0 : i32
    return %c0_i32, %c0_i32_0 : i32, i32
  }
  func.func @transform_2(%arg0: i32) -> (i32, i32) {
    %c0_i32 = arith.constant 0 : i32
    %c0_i32_0 = arith.constant 0 : i32
    %c0_i32_1 = arith.constant 0 : i32
    return %c0_i32, %c0_i32_0 : i32, i32
  }
  func.func @transform_3(%arg0: i32) -> (i32, i32) {
    %c0_i32 = arith.constant 0 : i32
    %c0_i32_0 = arith.constant 0 : i32
    %c0_i32_1 = arith.constant 0 : i32
    return %c0_i32, %c0_i32_0 : i32, i32
  }
  func.func @transform_4(%arg0: i32) -> (i32, i32) {
    %c0_i32 = arith.constant 0 : i32
    %c0_i32_0 = arith.constant 0 : i32
    %c0_i32_1 = arith.constant 0 : i32
    return %c0_i32, %c0_i32_0 : i32, i32
  }
  func.func @transform_5(%arg0: i32) -> (i32, i32) {
    %c0_i32 = arith.constant 0 : i32
    %c0_i32_0 = arith.constant 0 : i32
    return %arg0, %c0_i32 : i32, i32
  }
}

</mosaic_0001>

<bundles_post_ra>
// kernel: policy_network_forward.1
= control target key start
LH: loop header
LB: loop body
LE: loop exit
PB: predicated region body
PF: predicated region fallthrough
CT: control target
= control target key end

     0   :  { %10 = vsyncpa [#allocation3], 0  ;;  %s1015_s18 = smov 0   ;;  %s1017_s19 = smov 0   ;;  %s1140_s0 = inlined_call_operand.vmem [shape: f32[37,32], index: 0, kind: input, shape index: {}]   ;;  %s1141_s1 = inlined_call_operand.hbm [shape: bf16[32,128], index: 1, kind: input, shape index: {}]   ;;  %s1142_s2 = inlined_call_operand.vmem [shape: f32[1,128], index: 2, kind: input, shape index: {}]   ;;  %s1143_s3 = inlined_call_operand.vmem [shape: bf16[128,128], index: 3, kind: input, shape index: {}]   ;;  %s1144_s4 = inlined_call_operand.vmem [shape: f32[1,128], index: 4, kind: input, shape index: {}]   ;;  %s1145_s5 = inlined_call_operand.vmem [shape: f32[37,8], index: 5, kind: output, shape index: {}]  }
   0x1   :  { %s1019_s20 = smov 0  }
   0x2 LB: > { %s1028_s21 = sadd.s32 4294967295, %s948_s20   ;;  %s1030_s22 = sadd.s32 1, %s948_s20   ;;  %s948_s20 = sphi %s1019_s20, %s1149_s20   ;;  %s944_s19 = sphi %s1017_s19, %s1148_s19   ;;  %s940_s18 = sphi %s1015_s18, %s1147_s18  }
   0x3   : > { %s130_s23 = ssub.s32 %s948_s20, %s1030_s22  ;;  %s133_s24 = sadd.s32 1, %s944_s19 }
   0x4   : > { %p131_p0 = scmp.eq.s32.totalorder %s130_s23, 0  ;;  %p143_p1 = scmp.ne.s32.totalorder %s944_s19, %s940_s18 }
   0x5   : > { %p144_p2 = scmp.eq.s32.totalorder %s1028_s21, 2  ;;  %p670_p3 = scmp.ge.s32.totalorder %s948_s20, 1 }
   0x6   : > { %s1038_s25 = scalar_select %p131_p0, %s944_s19, %s133_s24  }
   0x7   : > { %p1040_p4 = por %p144_p2, %p143_p1  ;;  %p157_p5 = scmp.lt.s32.totalorder %s948_s20, 4 }
   0x8   : > { %p757_p6 = scmp.eq.s32.totalorder %s1028_s21, 0  ;;  %s168_s29 = sshll.u32 %s1141_s1, 4  ;;  %s169_s29 = int_to_ptr.hbm [resolvable:$true] %s168_s29 }
   0x9   : > { %p158_p7 = pnand %p670_p3, %p157_p5  ;;  %s982_s30 = smov [#allocation2]  }
   0xa   : > { %s170_s6 = sshll.u32 %s982_s30, 4  ;;  %s983_s7 = smov 64   ;;  %s171_s6 = int_to_ptr.vmem [resolvable:$true] %s170_s6 }
   0xb   : > { %p753_p8 = pneg %p158_p7  ;;  %s984_s8 = smov 4  }
   0xc   : > { %212 = sbr.rel (%p158_p7) target bundleno = 606 (0x25e), region = 40 }
   0xd   : > { %p754_p9 = pnand %p757_p6, %p753_p8 }
   0xf   : > { %756 = dma.hbm_to_vmem [thread:$0]  (!%p754_p9), %s169_s29, 256, %s171_s6, [#allocation3], %s983_s7, %s983_s7, %s984_s8  }
  0x11   : > { %935 = dma.done.wait (%p757_p6), [#allocation3], 256  }
  0x12   : > { %937 = vsyncadd (%p757_p6), [#allocation3], 4294967040  ;;  %s1055_s9 = sshll.u32 %s1028_s21, 1  ;;  %v737_v0 = vld [vmem:[#allocation2 + $0x8] sm:$0xff]  ;;  %v736_v1 = vld [vmem:[#allocation2] sm:$0xff]  ;;  %vm287_vm0 = vcmask 261120  }
  0x13   : > { %p249_p10 = scmp.lt.s32.totalorder %s1055_s9, 4  ;;  %v745_v2 = vld [vmem:[%s1143_s3 + $0x38] sm:$0xff]  ;;  %297 = vmatpush.bf16.msra.mxu0 %v737_v0  ;;  %v744_v5 = vld [vmem:[%s1143_s3 + $0x30] sm:$0xff]  ;;  %v743_v7 = vld [vmem:[%s1143_s3 + $0x28] sm:$0xff]  ;;  %s241_s17 = sand.u32 1, %s940_s18   ;;  %vm434_vm5 = vcmask 64512  }
  0x14   : > { %376 = vmatpush.bf16.msra.mxu1 %v745_v2  ;;  %v742_v8 = vld [vmem:[%s1143_s3 + $0x20] sm:$0xff]  ;;  %v741_v9 = vld [vmem:[%s1143_s3 + $0x18] sm:$0xff]  ;;  %v740_v10 = vld [vmem:[%s1143_s3 + $0x10] sm:$0xff]  ;;  %s675_s20 = sshll.u32 %s241_s17, 4  ;;  %s445_s18 = ssub.s32 (%p1040_p4), 5, %s1055_s9 }
  0x15   : > { %s250_s10 = scalar_select %p249_p10, %s1055_s9, 4  ;;  %v739_v11 = vld [vmem:[%s1143_s3 + $0x8] sm:$0xff]  ;;  %v738_v12 = vld [vmem:[%s1143_s3] sm:$0xff] }
  0x16   : > { %v850_v14 = vld [vmem:[%s1142_s2] ss:$0 sm:$0xff]  ;;  %s1093_s23 = scalar_lea.vmem [#allocation4], %s675_s20   ;;  %s746_s24 = sshll.u32 (%p1040_p4), %s1028_s21, 4 }
  0x17   : > { %s677_s11 = sshll.u32 %s250_s10, 3  ;;  %298 = vmatpush.bf16.msra.mxu0 %v736_v1  ;;  %v851_v21 = vld [vmem:[%s1144_s4] ss:$0 sm:$0xff]  ;;  %p446_p11 = scmp.lt.s32.totalorder (%p1040_p4), %s445_s18, 2 }
  0x18   : > { %s252_s14 = scalar_lea.vmem %s1140_s0, %s677_s11  ;;  %377 = vmatpush.bf16.msra.mxu1 %v744_v5  ;;  %s1106_s29 = scalar_lea.vmem (%p1040_p4), %s1145_s5, %s746_s24  }
  0x19   : > { %v264_v3 = vld [vmem:[%s252_s14] sm:$0xff]  ;;  %v265_v4 = vld [vmem:[%s252_s14 + $0x8] sm:$0xff] }
  0x1a   : > { %v266_v6 = vpack.c.bf16 %v265_v4, %v264_v3 }
  0x1c   : > { %686 = vmatmul.msk.bf16.vlgmr.msra.gmra.mxu0 %vm287_vm0, %v266_v6  ;;  %378 = vmatpush.bf16.msra.mxu1 %v743_v7 }
  0x20   : > { %379 = vmatpush.bf16.msra.mxu1 %v742_v8 }
  0x24   : > { %380 = vmatpush.bf16.msra.mxu1 %v741_v9 }
  0x28   : > { %381 = vmatpush.bf16.msra.mxu1 %v740_v10 }
  0x2c   : > { %382 = vmatpush.bf16.msra.mxu1 %v739_v11 }
  0x30   : > { %383 = vmatpush.bf16.msra.mxu1 %v738_v12 }
  0x99   : > { %v300_v13 = vpop.f32.mrf.mxu0 }
  0x9a   : > { %v301_v15 = vadd.f32 %v850_v14, %v300_v13 }
  0x9c   : > { %v305_v18 = vmax.f32 %v301_v15, 0.0 }
  0xa1   : > { %v302_v16 = vpop.f32.mrf.mxu0 }
  0xa2   : > { %v303_v17 = vadd.f32 %v850_v14, %v302_v16 }
  0xa4   : > { %v306_v19 = vmax.f32 %v303_v17, 0.0 }
  0xa6   : > { %v307_v20 = vpack.c.bf16 %v306_v19, %v305_v18 }
  0xa8   : > { %384 = vmatmul.bf16.vlgmr.msra.gmra.mxu1 %v307_v20 }
 0x125   : > { %v385_v22 = vpop.f32.mrf.mxu1 }
 0x126   : > { %v386_v23 = vadd.f32 %v851_v21, %v385_v22 }
 0x128   : > { %390 = vmax.xlane.f32.xlu0 %v386_v23 }
 0x12d   : > { %v387_v24 = vpop.f32.mrf.mxu1 }
 0x12e   : > { %v388_v25 = vadd.f32 %v851_v21, %v387_v24 }
 0x130   : > { %392 = vmax.xlane.f32.xlu0 %v388_v25 }
 0x19b   : > { %v391_v26 = vpop.xlane.xlu0 %390 }
 0x19c   : > { %v394_v27 = vsub.f32 %v386_v23, %v391_v26 }
 0x19e   : > { %v396_v28 = vmul.f32 1.442695, %v394_v27 }
 0x1a0   : > { %852 = vpow2.f32 %v396_v28 }
 0x1a3   : > { %v393_v29 = vpop.xlane.xlu0 %392 }
 0x1a4   : > { %v395_v30 = vsub.f32 %v388_v25, %v393_v29 }
 0x1a6   : > { %v853_v31 = vpop.eup %852  ;;  %v398_v32 = vmul.f32 1.442695, %v395_v30 }
 0x1a7   : > { %400 = vadd.xlane.f32.xlu1 %v853_v31 }
 0x1a8   : > { %854 = vpow2.f32 %v398_v32 }
 0x1ae   : > { %v855_v33 = vpop.eup %854 }
 0x1af   : > { %402 = vadd.xlane.f32.xlu1 %v855_v33 }
 0x21a   : > { %v401_v34 = vpop.xlane.xlu1 %400 }
 0x21b   : > { %856 = vrcp.f32 %v401_v34  ;;  %v415_v39 = vand.u32 2147483648, %v401_v34  ;;  %v413_v41 = vand.u32 2147483647, %v401_v34  ;;  %vm409_vm2 = vweird.f32 %v401_v34 }
 0x21d   : > { %v416_v44 = vor.u32 1.1754944e-38, %v415_v39  ;;  %vm414_vm4 = vcmp.eq.f32.partialorder %v413_v41, 8.507059e+37 }
 0x221   : > { %v857_v35 = vpop.eup %856 }
 0x222   : > { %v405_v36 = vmul.f32 %v857_v35, %v401_v34  ;;  %v403_v37 = vpop.xlane.xlu1 %402  ;;  %vm410_vm1 = vweird.f32 %v857_v35 }
 0x223   : > { %858 = vrcp.f32 %v403_v37  ;;  %vm411_vm3 = vmor %vm409_vm2, %vm410_vm1  ;;  %v430_v50 = vand.u32 2147483648, %v403_v37  ;;  %v428_v52 = vand.u32 2147483647, %v403_v37  ;;  %vm424_vm7 = vweird.f32 %v403_v37 }
 0x224   : > { %v406_v38 = vsub.f32 1.0, %v405_v36 }
 0x225   : > { %v431_v54 = vor.u32 1.1754944e-38, %v430_v50  ;;  %vm429_vm9 = vcmp.eq.f32.partialorder %v428_v52, 8.507059e+37 }
 0x226   : > { %v407_v40 = vmul.f32 %v857_v35, %v406_v38 }
 0x228   : > { %v408_v42 = vadd.f32 %v857_v35, %v407_v40 }
 0x229   : > { %v859_v43 = vpop.eup %858 }
 0x22a   : > { %v412_v45 = vsel %vm411_vm3, %v857_v35, %v408_v42  ;;  %v420_v46 = vmul.f32 %v859_v43, %v403_v37  ;;  %vm425_vm6 = vweird.f32 %v859_v43 }
 0x22b   : > { %v417_v47 = vsel %vm414_vm4, %v416_v44, %v412_v45  ;;  %vm426_vm8 = vmor %vm424_vm7, %vm425_vm6 }
 0x22c   : > { %v418_v48 = vmul.f32 %v853_v31, %v417_v47  ;;  %v421_v49 = vsub.f32 1.0, %v420_v46 }
 0x22e   : > { %435 = vst.msk [vmem:[%s1093_s23] sm:$0xff] %vm434_vm5, %v418_v48  ;;  %v422_v51 = vmul.f32 %v859_v43, %v421_v49 }
 0x230   : > { %v423_v53 = vadd.f32 %v859_v43, %v422_v51 }
 0x232   : > { %v427_v55 = vsel %vm426_vm8, %v859_v43, %v423_v53  ;;  %443 = sbr.rel (!%p1040_p4) target bundleno = 606 (0x25e), region = 48 }
 0x233   : > { %v432_v56 = vsel %vm429_vm9, %v431_v54, %v427_v55 }
 0x234   : > { %v433_v57 = vmul.f32 %v855_v33, %v432_v56 }
 0x236   : > { %436 = vst.msk [vmem:[%s1093_s23 + $0x8] sm:$0xff] %vm434_vm5, %v433_v57 }
 0x237   : > { %s1151_s18 = smov (!%p446_p11, %s445_s18), 2 }
 0x238   : > { %s721_s30 = sshll.u32 %s1151_s18, 3 }
 0x239   : > { %p724_p12 = scmp.eq.s32.totalorder %s721_s30, 0 }
 0x23a   : > { %s1112_s6 = sshrl.u32 (!%p724_p12), %s1151_s18, 1 }
 0x23b   : > { %454 = sbr.rel (%p724_p12) target bundleno = 606 (0x25e), region = 52  ;;  %p725_p13 = scmp.le.s32.totalorder (!%p724_p12), %s1112_s6, 0 }
 0x240   : > { %616 = sbr.rel (%p725_p13) target bundleno = 589 (0x24d), region = 129  ;;  %s950_s21 = smov (!%p725_p13), %s1106_s29  }
 0x241   : > { %s954_s26 = smov (!%p725_p13), %s1093_s23   ;;  %s958_s9 = smov (!%p725_p13), 0  }
 0x242   : > { %s962_s7 = smov (!%p725_p13), 0  }
 0x245 LB: >> { %v519_v58 = vld [vmem:[%s956_s26] sm:$0xff]  ;;  %v521_v59 = vld [vmem:[%s956_s26 + $0x8] sm:$0xff]  ;;  %s523_s8 = sadd.s32 1, %s960_s9  ;;  %s513_s7 = sadd.s32 1, %s964_s7   ;;  %s964_s7 = sphi %s962_s7, %s513_s7   ;;  %s960_s9 = sphi %s958_s9, %s959_s9   ;;  %s956_s26 = sphi %s954_s26, %s528_s26   ;;  %s952_s21 = sphi %s950_s21, %s529_s21  }
 0x246   : >> { %520 = vst [vmem:[%s952_s21] sm:$0xff] %v519_v58  ;;  %p524_p0 = scmp.ge.s32.totalorder %s523_s8, %s1112_s6  ;;  %p512_p1 = scmp.ge.s32.totalorder %s513_s7, %s1112_s6 }
 0x247   : >> { %522 = vst [vmem:[%s952_s21 + $0x8] sm:$0xff] %v521_v59 }
 0x248   : >> { %s1153_s8 = smov (%p524_p0, %s523_s8), 0  ;;  %515 = sbr.rel (!%p512_p1) target bundleno = 581 (0x245), region = 135 }
 0x249   : >> { %s726_s10 = sshll.u32 %s1153_s8, 4  ;;  %s959_s9 = smov %s1153_s8  }
 0x24a   : >> { %s528_s26 = scalar_lea.vmem %s1093_s23, %s726_s10 [#allocation4]   ;;  %s529_s21 = scalar_lea.vmem %s1106_s29, %s726_s10  }
 0x24d PF: > { %s1122_s11 = sand.u32 1, %s1151_s18   ;;  %s747_s12 = sshll.u32 %s1112_s6, 4 }
 0x24e   : > { %s534_s13 = scalar_lea.vmem %s1093_s23, %s747_s12 [#allocation4]   ;;  %s536_s14 = scalar_lea.vmem %s1106_s29, %s747_s12  }
 0x24f   : > { %p731_p2 = scmp.le.s32.totalorder %s1122_s11, 0 }
 0x250   : > { %s966_s15 = smov (!%p731_p2), %s536_s14   ;;  %s970_s16 = smov (!%p731_p2), %s534_s13  }
 0x251   : > { %630 = sbr.rel (%p731_p2) target bundleno = 606 (0x25e), region = 140  ;;  %s974_s17 = smov (!%p731_p2), 0  }
 0x252   : > { %s978_s20 = smov (!%p731_p2), 0  }
 0x256 LB: >> { %v546_v60 = vld [vmem:[%s972_s16] sm:$0xff]  ;;  %s548_s18 = sadd.s32 1, %s976_s17  ;;  %s540_s20 = sadd.s32 1, %s980_s20   ;;  %s980_s20 = sphi %s978_s20, %s540_s20   ;;  %s976_s17 = sphi %s974_s17, %s975_s17   ;;  %s972_s16 = sphi %s970_s16, %s553_s16   ;;  %s968_s15 = sphi %s966_s15, %s554_s15  }
 0x257   : >> { %547 = vst [vmem:[%s968_s15] sm:$0xff] %v546_v60  ;;  %p549_p3 = scmp.ge.s32.totalorder %s548_s18, %s1122_s11  ;;  %p539_p4 = scmp.ge.s32.totalorder %s540_s20, %s1122_s11 }
 0x259   : >> { %s1155_s18 = smov (%p549_p3, %s548_s18), 0  ;;  %542 = sbr.rel (!%p539_p4) target bundleno = 598 (0x256), region = 146 }
 0x25a   : >> { %s732_s23 = sshll.u32 %s1155_s18, 3  ;;  %s975_s17 = smov %s1155_s18  }
 0x25b   : >> { %s553_s16 = scalar_lea.vmem %s534_s13, %s732_s23 [#allocation4]   ;;  %s554_s15 = scalar_lea.vmem %s536_s14, %s732_s23  }
 0x25e PF: > { %p13_p5 = scmp.ge.s32.totalorder %s1030_s22, 5   ;;  %s1147_s18 = smov %s944_s19 }
 0x25f   : > { %s1148_s19 = smov %s1038_s25  ;;  %s1149_s20 = smov %s1030_s22 }
 0x260   :  { %15 = sbr.rel (!%p13_p5) target bundleno = 2 (0x2), region = 157 }
 0x265   :  { %570 = vsyncpa [#allocation3], 1 }
 0x266   :  { %572 = vsyncpa [#allocation3 + $0x1], 1 }

</bundles_post_ra>
